<compile_context>
chip_gen: v6e
topology: v6e:2x2x1
jax: 0.10.0
libtpu: 0.0.40
codegen_flags: <defaults>
</compile_context>

<pallas_src>
import jax
import jax.numpy as jnp
from jax import lax
from jax.experimental import pallas as pl
from jax.experimental.pallas import tpu as pltpu


def _round_up(v, m):
    return ((v + m - 1) // m) * m


def _choose_tiling(N, HW_pad, max_step_pixels):
    """Pick (NB images per step, TM pixels per image per step)."""
    # Pixel tile: as large as the budget allows, split near-evenly so the
    # last tile is not mostly padding.
    if HW_pad <= max_step_pixels:
        tm = HW_pad
    else:
        n_tiles = pl.cdiv(HW_pad, max_step_pixels)
        tm = _round_up(pl.cdiv(HW_pad, n_tiles), 128)

    # Fold batch images into a step when spatial tiles are small so one grid
    # step still moves enough bytes to amortize the fixed per-step overhead.
    nb = max(1, min(N, 8, max_step_pixels // tm))

    n_batch_steps = pl.cdiv(N, nb)
    n_pix_steps = pl.cdiv(HW_pad, tm)
    # v7x megacore: keep >=2 steps on the parallel axes when there is enough
    # work, preferably by splitting the pixel axis.
    if n_batch_steps * n_pix_steps == 1:
        if HW_pad >= 256:
            tm = _round_up(pl.cdiv(HW_pad, 2), 128)
        elif N >= 2:
            nb = pl.cdiv(N, 2)
    return nb, tm


def _make_fused_kernel(num_layers, nb, tm, chunk, matmul_dtype):
    """Fused MLP: h_{l+1} = relu(W_l @ h_l + b_l), all layers in one body.

    The pixel tile is processed in `chunk`-lane sub-chunks so the per-layer
    intermediates (at most (32, chunk) f32) stay in vector registers.
    """
    n_chunks = tm // chunk

    def kernel(x_ref, *rest):
        o_ref = rest[-1]
        params = rest[:-1]

        # Tiny weights / biases: loaded once per grid step, casts hoisted out
        # of the chunk loop.  (Explicit MXU driving via matmul_push_rhs to pin
        # the weight stationary was considered but left to Mosaic's lowering.)
        ws = [params[2 * l][...].astype(matmul_dtype) for l in range(num_layers)]
        bs = [params[2 * l + 1][...].astype(jnp.float32) for l in range(num_layers)]

        def process(b, off):
            h = x_ref[b, :, pl.ds(off, chunk)].astype(jnp.float32)   # (Cin, chunk)
            for l in range(num_layers):                               # static depth
                h = jnp.dot(ws[l], h.astype(matmul_dtype),
                            preferred_element_type=jnp.float32)       # (Cout_l, chunk)
                h = jnp.maximum(h + bs[l], 0.0)                        # bias bcast + ReLU
            o_ref[b, :, pl.ds(off, chunk)] = h.astype(o_ref.dtype)

        for b in range(nb):                      # static unroll; nb <= 8
            if n_chunks == 1:
                process(b, 0)
            else:
                def body(c, carry):
                    off = pl.multiple_of(c * chunk, chunk)
                    process(b, off)
                    return carry
                lax.fori_loop(0, n_chunks, body, 0, unroll=min(n_chunks, 8))

    return kernel


def fexp_mlp_forward(x_nchw, weights, biases, *,
                     max_step_pixels=32768, matmul_dtype=jnp.float32):
    """Equivalent of FExpMLP.forward on an NCHW input.

    x_nchw:  (N, C, H, W) consumed channel-major (no layout transposes).
    weights: list of (Cout_l, Cin_l) (1x1-conv weights with kernel dims squeezed).
    biases:  list of (Cout_l, 1).
    matmul_dtype: jnp.float32 (exact) or jnp.bfloat16 (MXU-native fast path;
      accumulation and bias/ReLU stay f32).
    """
    N, C, H, W = x_nchw.shape
    assert C == weights[0].shape[1]
    num_layers = len(weights)
    cout_last = weights[-1].shape[0]
    HW = H * W
    HW_pad = _round_up(HW, 128)                 # lane-dense pixel axis
    max_step_pixels = max(128, _round_up(max_step_pixels, 128))

    x = x_nchw.reshape(N, C, HW)                # free reshape (already channel-major)
    if HW_pad != HW:
        x = jnp.pad(x, ((0, 0), (0, 0), (0, HW_pad - HW)))

    nb, tm = _choose_tiling(N, HW_pad, max_step_pixels)
    chunk = max(c for c in (512, 256, 128) if tm % c == 0)
    grid = (pl.cdiv(N, nb), pl.cdiv(HW_pad, tm))

    in_specs = [pl.BlockSpec((nb, C, tm), lambda n, t: (n, 0, t))]
    for w, b in zip(weights, biases):
        co, ci = w.shape
        in_specs.append(pl.BlockSpec((co, ci), lambda n, t: (0, 0)))   # full weight
        in_specs.append(pl.BlockSpec((co, 1), lambda n, t: (0, 0)))    # full bias
    out_spec = pl.BlockSpec((nb, cout_last, tm), lambda n, t: (n, 0, t))

    flops = 2 * N * HW * sum(w.shape[0] * w.shape[1] for w in weights)
    bytes_accessed = (
        (x.size + N * HW_pad * cout_last) * x.dtype.itemsize
        + sum(w.size * w.dtype.itemsize for w in weights)
        + sum(b.size * b.dtype.itemsize for b in biases))

    # Per-step VMEM footprint: double-buffered IO blocks + padded param tiles
    # + margin for internal scratch.  Only raise vmem_limit_bytes when it
    # exceeds the most conservative scoped default; cap under v7x physical.
    io_bytes = 2 * nb * (C + cout_last) * tm * x.dtype.itemsize
    param_bytes = sum(
        2 * (_round_up(w.shape[0], 8) * _round_up(w.shape[1], 128)
             + _round_up(w.shape[0], 8) * 128) * 4
        for w in weights)
    vmem_needed = io_bytes + param_bytes + (2 << 20)
    compiler_kwargs = dict(dimension_semantics=("parallel", "parallel"))
    if vmem_needed > (12 << 20):
        compiler_kwargs["vmem_limit_bytes"] = int(
            min(_round_up(2 * vmem_needed, 1 << 20), 48 << 20))

    params = []
    for w, b in zip(weights, biases):
        params.extend([w, b])

    out = pl.pallas_call(
        _make_fused_kernel(num_layers, nb, tm, chunk, matmul_dtype),
        out_shape=jax.ShapeDtypeStruct((N, cout_last, HW_pad), x_nchw.dtype),
        grid_spec=pltpu.PrefetchScalarGridSpec(
            num_scalar_prefetch=0,
            grid=grid,
            in_specs=in_specs,
            out_specs=out_spec,
        ),
        compiler_params=pltpu.CompilerParams(**compiler_kwargs),
        cost_estimate=pl.CostEstimate(
            flops=flops, transcendentals=0, bytes_accessed=bytes_accessed),
    )(x, *params)

    if HW_pad != HW:
        out = out[:, :, :HW]
    return out.reshape(N, cout_last, H, W)


def init_params(mlplist, key):
    """Deterministic params; shapes match nn.Conv2d(cin, cout, 1).

    PyTorch weight is (cout, cin, 1, 1); we keep the (cout, cin) matrix
    directly (channel-major compute), and bias as (cout, 1).
    """
    weights, biases = [], []
    for i in range(len(mlplist) - 1):
        cin, cout = mlplist[i], mlplist[i + 1]
        key, kw, kb = jax.random.split(key, 3)
        bound = 1.0 / (cin ** 0.5)  # same range as PyTorch default conv init
        weights.append(
            jax.random.uniform(kw, (cout, cin), jnp.float32, -bound, bound))
        biases.append(
            jax.random.uniform(kb, (cout, 1), jnp.float32, -bound, bound))
    return weights, biases


if __name__ == "__main__":
    key = jax.random.PRNGKey(0)
    k_x, k_p = jax.random.split(key)

    mlplist = [4, 32, 32, 8]                                  # 4 -> 32 -> 32 -> 8
    x = jax.random.normal(k_x, (2, 4, 16, 16), jnp.float32)   # NCHW
    weights, biases = init_params(mlplist, k_p)

    # Exact f32 path (matches PyTorch semantics).
    out = jax.block_until_ready(fexp_mlp_forward(x, weights, biases))

    # Pure-JAX reference of the same semantics (1x1 conv + ReLU per layer).
    ref = x
    for w, b in zip(weights, biases):
        ref = jnp.einsum("oc,nchw->nohw", w, ref) + b.reshape(1, -1, 1, 1)
        ref = jnp.maximum(ref, 0.0)

    assert out.shape == (2, mlplist[-1], 16, 16)
    assert jnp.allclose(out, ref, atol=1e-5, rtol=1e-5)

    # bf16-matmul fast path (MXU-native); loose tolerance vs the f32 reference.
    out_bf16 = jax.block_until_ready(
        fexp_mlp_forward(x, weights, biases, matmul_dtype=jnp.bfloat16))
    assert jnp.allclose(out_bf16, ref, atol=5e-2, rtol=5e-2)

    print("KERNEL_OK")
</pallas_src>

<mosaic_0001>
module attributes {stable_mosaic.version = 11 : i64} {
  func.func @kernel(%arg0: i32, %arg1: i32, %arg2: memref<2x4x128xf32, #tpu.memory_space<vmem>>, %arg3: memref<32x4xf32, #tpu.memory_space<vmem>>, %arg4: memref<32x1xf32, #tpu.memory_space<vmem>>, %arg5: memref<32x32xf32, #tpu.memory_space<vmem>>, %arg6: memref<32x1xf32, #tpu.memory_space<vmem>>, %arg7: memref<8x32xf32, #tpu.memory_space<vmem>>, %arg8: memref<8x1xf32, #tpu.memory_space<vmem>>, %arg9: memref<2x8x128xf32, #tpu.memory_space<vmem>>) attributes {dimension_semantics = [#tpu.dimension_semantics<parallel>, #tpu.dimension_semantics<parallel>], iteration_bounds = array<i64: 1, 2>, scalar_prefetch = 0 : i64, scratch_operands = 0 : i64, tpu.core_type = #tpu.core_type<tc>, window_params = [{transform_indices = @transform_0, window_bounds = array<i64: 2, 4, 128>}, {pipeline_mode = #tpu.pipeline_mode<synchronous>, transform_indices = @transform_1, window_bounds = array<i64: 32, 4>}, {pipeline_mode = #tpu.pipeline_mode<synchronous>, transform_indices = @transform_2, window_bounds = array<i64: 32, 1>}, {pipeline_mode = #tpu.pipeline_mode<synchronous>, transform_indices = @transform_3, window_bounds = array<i64: 32, 32>}, {pipeline_mode = #tpu.pipeline_mode<synchronous>, transform_indices = @transform_4, window_bounds = array<i64: 32, 1>}, {pipeline_mode = #tpu.pipeline_mode<synchronous>, transform_indices = @transform_5, window_bounds = array<i64: 8, 32>}, {pipeline_mode = #tpu.pipeline_mode<synchronous>, transform_indices = @transform_6, window_bounds = array<i64: 8, 1>}, {transform_indices = @transform_7, window_bounds = array<i64: 2, 8, 128>}]} {
    %c0 = arith.constant 0 : index
    %c0_0 = arith.constant 0 : index
    %0 = vector.load %arg3[%c0, %c0_0] : memref<32x4xf32, #tpu.memory_space<vmem>>, vector<32x4xf32>
    %c0_1 = arith.constant 0 : index
    %c0_2 = arith.constant 0 : index
    %1 = vector.load %arg5[%c0_1, %c0_2] : memref<32x32xf32, #tpu.memory_space<vmem>>, vector<32x32xf32>
    %c0_3 = arith.constant 0 : index
    %c0_4 = arith.constant 0 : index
    %2 = vector.load %arg7[%c0_3, %c0_4] : memref<8x32xf32, #tpu.memory_space<vmem>>, vector<8x32xf32>
    %c0_5 = arith.constant 0 : index
    %c0_6 = arith.constant 0 : index
    %3 = vector.load %arg4[%c0_5, %c0_6] : memref<32x1xf32, #tpu.memory_space<vmem>>, vector<32x1xf32>
    %c0_7 = arith.constant 0 : index
    %c0_8 = arith.constant 0 : index
    %4 = vector.load %arg6[%c0_7, %c0_8] : memref<32x1xf32, #tpu.memory_space<vmem>>, vector<32x1xf32>
    %c0_9 = arith.constant 0 : index
    %c0_10 = arith.constant 0 : index
    %5 = vector.load %arg8[%c0_9, %c0_10] : memref<8x1xf32, #tpu.memory_space<vmem>>, vector<8x1xf32>
    %c0_11 = arith.constant 0 : index
    %c0_12 = arith.constant 0 : index
    %c0_13 = arith.constant 0 : index
    %6 = vector.load %arg2[%c0_11, %c0_12, %c0_13] : memref<2x4x128xf32, #tpu.memory_space<vmem>>, vector<1x4x128xf32>
    %7 = vector.shape_cast %6 : vector<1x4x128xf32> to vector<4x128xf32>
    %cst = arith.constant dense<0.000000e+00> : vector<32x128xf32>
    %8 = tpu.matmul %0, %7, %cst {dimension_numbers = #tpu.dot_dimension_numbers<[1], [0], [0], [1], [0, 0, 1, 1], [], []>} : vector<32x4xf32>, vector<4x128xf32>, vector<32x128xf32> -> vector<32x128xf32>
    %9 = vector.broadcast %3 : vector<32x1xf32> to vector<32x128xf32>
    %10 = arith.addf %8, %9 : vector<32x128xf32>
    %cst_14 = arith.constant 0.000000e+00 : f32
    %11 = vector.broadcast %cst_14 : f32 to vector<32x128xf32>
    %12 = arith.maximumf %10, %11 : vector<32x128xf32>
    %cst_15 = arith.constant dense<0.000000e+00> : vector<32x128xf32>
    %13 = tpu.matmul %1, %12, %cst_15 {dimension_numbers = #tpu.dot_dimension_numbers<[1], [0], [0], [1], [0, 0, 1, 1], [], []>} : vector<32x32xf32>, vector<32x128xf32>, vector<32x128xf32> -> vector<32x128xf32>
    %14 = vector.broadcast %4 : vector<32x1xf32> to vector<32x128xf32>
    %15 = arith.addf %13, %14 : vector<32x128xf32>
    %cst_16 = arith.constant 0.000000e+00 : f32
    %16 = vector.broadcast %cst_16 : f32 to vector<32x128xf32>
    %17 = arith.maximumf %15, %16 : vector<32x128xf32>
    %cst_17 = arith.constant dense<0.000000e+00> : vector<8x128xf32>
    %18 = tpu.matmul %2, %17, %cst_17 {dimension_numbers = #tpu.dot_dimension_numbers<[1], [0], [0], [1], [0, 0, 1, 1], [], []>} : vector<8x32xf32>, vector<32x128xf32>, vector<8x128xf32> -> vector<8x128xf32>
    %19 = vector.broadcast %5 : vector<8x1xf32> to vector<8x128xf32>
    %20 = arith.addf %18, %19 : vector<8x128xf32>
    %cst_18 = arith.constant 0.000000e+00 : f32
    %21 = vector.broadcast %cst_18 : f32 to vector<8x128xf32>
    %22 = arith.maximumf %20, %21 : vector<8x128xf32>
    %c0_19 = arith.constant 0 : index
    %c0_20 = arith.constant 0 : index
    %c0_21 = arith.constant 0 : index
    %23 = vector.load %arg9[%c0_19, %c0_20, %c0_21] : memref<2x8x128xf32, #tpu.memory_space<vmem>>, vector<1x8x128xf32>
    %24 = vector.shape_cast %23 : vector<1x8x128xf32> to vector<8x128xf32>
    %25 = vector.shape_cast %22 : vector<8x128xf32> to vector<1x8x128xf32>
    tpu.vector_store %arg9[%c0_19, %c0_20, %c0_21], %25 {strides = array<i32>} : memref<2x8x128xf32, #tpu.memory_space<vmem>>, vector<1x8x128xf32>,
    %c1 = arith.constant 1 : index
    %c0_22 = arith.constant 0 : index
    %c0_23 = arith.constant 0 : index
    %26 = vector.load %arg2[%c1, %c0_22, %c0_23] : memref<2x4x128xf32, #tpu.memory_space<vmem>>, vector<1x4x128xf32>
    %27 = vector.shape_cast %26 : vector<1x4x128xf32> to vector<4x128xf32>
    %cst_24 = arith.constant dense<0.000000e+00> : vector<32x128xf32>
    %28 = tpu.matmul %0, %27, %cst_24 {dimension_numbers = #tpu.dot_dimension_numbers<[1], [0], [0], [1], [0, 0, 1, 1], [], []>} : vector<32x4xf32>, vector<4x128xf32>, vector<32x128xf32> -> vector<32x128xf32>
    %29 = vector.broadcast %3 : vector<32x1xf32> to vector<32x128xf32>
    %30 = arith.addf %28, %29 : vector<32x128xf32>
    %cst_25 = arith.constant 0.000000e+00 : f32
    %31 = vector.broadcast %cst_25 : f32 to vector<32x128xf32>
    %32 = arith.maximumf %30, %31 : vector<32x128xf32>
    %cst_26 = arith.constant dense<0.000000e+00> : vector<32x128xf32>
    %33 = tpu.matmul %1, %32, %cst_26 {dimension_numbers = #tpu.dot_dimension_numbers<[1], [0], [0], [1], [0, 0, 1, 1], [], []>} : vector<32x32xf32>, vector<32x128xf32>, vector<32x128xf32> -> vector<32x128xf32>
    %34 = vector.broadcast %4 : vector<32x1xf32> to vector<32x128xf32>
    %35 = arith.addf %33, %34 : vector<32x128xf32>
    %cst_27 = arith.constant 0.000000e+00 : f32
    %36 = vector.broadcast %cst_27 : f32 to vector<32x128xf32>
    %37 = arith.maximumf %35, %36 : vector<32x128xf32>
    %cst_28 = arith.constant dense<0.000000e+00> : vector<8x128xf32>
    %38 = tpu.matmul %2, %37, %cst_28 {dimension_numbers = #tpu.dot_dimension_numbers<[1], [0], [0], [1], [0, 0, 1, 1], [], []>} : vector<8x32xf32>, vector<32x128xf32>, vector<8x128xf32> -> vector<8x128xf32>
    %39 = vector.broadcast %5 : vector<8x1xf32> to vector<8x128xf32>
    %40 = arith.addf %38, %39 : vector<8x128xf32>
    %cst_29 = arith.constant 0.000000e+00 : f32
    %41 = vector.broadcast %cst_29 : f32 to vector<8x128xf32>
    %42 = arith.maximumf %40, %41 : vector<8x128xf32>
    %c1_30 = arith.constant 1 : index
    %c0_31 = arith.constant 0 : index
    %c0_32 = arith.constant 0 : index
    %43 = vector.load %arg9[%c1_30, %c0_31, %c0_32] : memref<2x8x128xf32, #tpu.memory_space<vmem>>, vector<1x8x128xf32>
    %44 = vector.shape_cast %43 : vector<1x8x128xf32> to vector<8x128xf32>
    %45 = vector.shape_cast %42 : vector<8x128xf32> to vector<1x8x128xf32>
    tpu.vector_store %arg9[%c1_30, %c0_31, %c0_32], %45 {strides = array<i32>} : memref<2x8x128xf32, #tpu.memory_space<vmem>>, vector<1x8x128xf32>,
    return
  }
  func.func @transform_0(%arg0: i32, %arg1: i32) -> (i32, i32, i32) {
    %c0_i32 = arith.constant 0 : i32
    %c0_i32_0 = arith.constant 0 : i32
    return %arg0, %c0_i32, %arg1 : i32, i32, i32
  }
  func.func @transform_1(%arg0: i32, %arg1: i32) -> (i32, i32) {
    %c0_i32 = arith.constant 0 : i32
    %c0_i32_0 = arith.constant 0 : i32
    %c0_i32_1 = arith.constant 0 : i32
    return %c0_i32, %c0_i32_0 : i32, i32
  }
  func.func @transform_2(%arg0: i32, %arg1: i32) -> (i32, i32) {
    %c0_i32 = arith.constant 0 : i32
    %c0_i32_0 = arith.constant 0 : i32
    %c0_i32_1 = arith.constant 0 : i32
    return %c0_i32, %c0_i32_0 : i32, i32
  }
  func.func @transform_3(%arg0: i32, %arg1: i32) -> (i32, i32) {
    %c0_i32 = arith.constant 0 : i32
    %c0_i32_0 = arith.constant 0 : i32
    %c0_i32_1 = arith.constant 0 : i32
    return %c0_i32, %c0_i32_0 : i32, i32
  }
  func.func @transform_4(%arg0: i32, %arg1: i32) -> (i32, i32) {
    %c0_i32 = arith.constant 0 : i32
    %c0_i32_0 = arith.constant 0 : i32
    %c0_i32_1 = arith.constant 0 : i32
    return %c0_i32, %c0_i32_0 : i32, i32
  }
  func.func @transform_5(%arg0: i32, %arg1: i32) -> (i32, i32) {
    %c0_i32 = arith.constant 0 : i32
    %c0_i32_0 = arith.constant 0 : i32
    %c0_i32_1 = arith.constant 0 : i32
    return %c0_i32, %c0_i32_0 : i32, i32
  }
  func.func @transform_6(%arg0: i32, %arg1: i32) -> (i32, i32) {
    %c0_i32 = arith.constant 0 : i32
    %c0_i32_0 = arith.constant 0 : i32
    %c0_i32_1 = arith.constant 0 : i32
    return %c0_i32, %c0_i32_0 : i32, i32
  }
  func.func @transform_7(%arg0: i32, %arg1: i32) -> (i32, i32, i32) {
    %c0_i32 = arith.constant 0 : i32
    %c0_i32_0 = arith.constant 0 : i32
    return %arg0, %c0_i32, %arg1 : i32, i32, i32
  }
}

</mosaic_0001>

<bundles_post_ra>
// kernel: tpu_custom_call.1
= control target key start
LH: loop header
LB: loop body
LE: loop exit
PB: predicated region body
PF: predicated region fallthrough
CT: control target
= control target key end

     0   :  { %12 = vsyncpa [#allocation4], 0  ;;  %s1645_s0 = inlined_call_operand.vmem [shape: f32[2,4,256], index: 0, kind: input, shape index: {}]   ;;  %s1646_s1 = inlined_call_operand.vmem [shape: f32[32,4], index: 1, kind: input, shape index: {}]   ;;  %s1647_s2 = inlined_call_operand.vmem [shape: f32[32,1], index: 2, kind: input, shape index: {}]   ;;  %s1648_s3 = inlined_call_operand.vmem [shape: f32[32,32], index: 3, kind: input, shape index: {}]   ;;  %s1649_s4 = inlined_call_operand.vmem [shape: f32[32,1], index: 4, kind: input, shape index: {}]   ;;  %s1650_s5 = inlined_call_operand.vmem [shape: f32[8,32], index: 5, kind: input, shape index: {}]   ;;  %s1651_s6 = inlined_call_operand.vmem [shape: f32[8,1], index: 6, kind: input, shape index: {}]   ;;  %s1652_s7 = inlined_call_operand.hbm [shape: f32[2,8,256], index: 7, kind: output, shape index: {}]  }
   0x1   :  { %14 = vsyncpa [#allocation4 + $0x1], 0  ;;  %s1369_s24 = smov 0   ;;  %s1371_s25 = smov 0  }
   0x2   :  { %s1373_s26 = smov 0   ;;  %s1375_s27 = smov 0  }
   0x3   :  { %s1377_s28 = smov 0   ;;  %s1379_s29 = smov 0  }
   0x4 LB: > { %s1044_s30 = sadd.s32 4294967295, %s1320_s29   ;;  %s1045_s8 = sadd.s32 4294967294, %s1320_s29   ;;  %s1320_s29 = sphi %s1379_s29, %s20_s29   ;;  %s1316_s28 = sphi %s1377_s28, %s1659_s28   ;;  %s1312_s27 = sphi %s1375_s27, %s1658_s27   ;;  %s1308_s26 = sphi %s1373_s26, %s1657_s26   ;;  %s1304_s25 = sphi %s1371_s25, %s1656_s25   ;;  %s1300_s24 = sphi %s1369_s24, %s1655_s24  }
   0x5   : > { %s29_s9 = sadd.s32 1, %s1316_s28  ;;  %s41_s10 = sadd.s32 1, %s1308_s26 }
   0x6   : > { %p30_p0 = scmp.ge.s32.totalorder %s29_s9, 2  ;;  %p48_p1 = scmp.ne.s32.totalorder %s1308_s26, %s1304_s25 }
   0x7   : > { %p49_p2 = scmp.eq.s32.totalorder %s1320_s29, 0  ;;  %p206_p3 = scmp.eq.s32.totalorder %s1044_s30, 1 }
   0x8   : > { %s1661_s9 = smov (%p30_p0, %s29_s9), 0  ;;  %p211_p6 = scmp.ne.s32.totalorder %s1304_s25, %s1300_s24 }
   0x9   : > { %p50_p4 = por %p49_p2, %p48_p1  ;;  %p1408_p5 = por %p206_p3, %p48_p1 }
   0xa   : > { %s37_s12 = ssub.s32 %s1316_s28, %s1661_s9  ;;  %p212_p8 = scmp.eq.s32.totalorder %s1045_s8, 1 }
   0xb   : > { %p39_p7 = scmp.eq.s32.totalorder %s37_s12, 0  ;;  %p1047_p10 = scmp.ge.s32.totalorder %s1320_s29, 2 }
   0xc   : > { %p1419_p9 = por %p212_p8, %p211_p6 }
   0xd   : > { %s1417_s13 = scalar_select %p39_p7, %s1308_s26, %s41_s10  }
   0xe   : > { %246 = sbr.rel (%p1047_p10) target bundleno = 24 (0x18), region = 40 }
  0x13   : > { %249 = sbr.rel (!%p50_p4) target bundleno = 24 (0x18), region = 44  ;;  %s251_s15 = sand.u32 (%p50_p4), 1, %s1308_s26  }
  0x14   : > { %s1049_s16 = sshll.u32 (%p50_p4), %s1316_s28, 2  ;;  %s1048_s17 = sshll.u32 (%p50_p4), %s251_s15, 3 }
  0x15   : > { %s258_s20 = scalar_lea.vmem (%p50_p4), %s1645_s0, %s1049_s16  ;;  %s253_s21 = scalar_lea.vmem (%p50_p4), [#allocation2], %s1048_s17 }
  0x16   : > { %v275_v0 = vld [vmem:[%s258_s20] sm:$0xf] (%p50_p4)  ;;  %v277_v1 = vld [vmem:[%s258_s20 + $0x8] sm:$0xf] (%p50_p4) }
  0x17   : > { %276 = vst [vmem:[%s253_s21] sm:$0xf] (%p50_p4), %v275_v0  ;;  %278 = vst [vmem:[%s253_s21 + $0x4] sm:$0xf] (%p50_p4), %v277_v1 }
  0x18 PF: > { %p1050_p11 = scmp.ge.s32.totalorder %s1320_s29, 1  ;;  %p305_p12 = scmp.lt.s32.totalorder %s1320_s29, 3 }
  0x1a   : > { %p306_p13 = pnand %p1050_p11, %p305_p12 }
  0x1b   : > { %s1434_s22 = sand.u32 (!%p306_p13), 1, %s1304_s25   ;;  %s1076_s16 = sshll.u32 (!%p306_p13), %s1312_s27, 7 }
  0x1c   : > { %309 = sbr.rel (%p306_p13) target bundleno = 1088 (0x440), region = 85  ;;  %s1051_s8 = sshll.u32 (!%p306_p13), %s1434_s22, 3 }
  0x1d   : > { %s1450_s17 = scalar_lea.vmem (!%p306_p13), [#allocation2], %s1051_s8  ;;  %s1596_s20 = scalar_lea.hbm (!%p306_p13), %s1652_s7, %s1076_s16 }
  0x1e   : > { %s949_s21 = scalar_lea.sflag (!%p306_p13), [#allocation4], %s1434_s22  ;;  %s1325_s27 = smov (!%p306_p13), [#allocation3]  }
  0x1f   : > { %s1248_s30 = sshll.u32 (!%p306_p13), %s1325_s27, 4  ;;  %s1249_s30 = int_to_ptr.vmem [resolvable:$false] %s1248_s30 }
  0x20   : > { %s1250_s8 = scalar_lea.vmem (!%p306_p13), %s1249_s30, 512 }
  0x21   : > { %v1439_v2 = vld [vmem:[%s1646_s1] sm:$0xff]  ;;  %vm384_vm0 = vcmask 31744   ;;  %vm397_vm1 = vcmask 1043456   ;;  %v357_v3 = vld [vmem:[%s1647_s2 + $0x18] sm:$0xff]  ;;  %v1322_v4 = vmov 0   ;;  %v355_v5 = vld [vmem:[%s1647_s2 + $0x8] sm:$0xff] }
  0x22   : > { %1117 = vmatprep.mubr.msk.f32.mxu0 %vm384_vm0, %v1439_v2  ;;  %1242 = vset.pattern.permute.xlu0 %v1322_v4  ;;  %v363_v6 = vld [vmem:[%s1450_s17] sm:$0xf]  ;;  %v1462_v8 = vld [vmem:[%s1646_s1 + $0x10] sm:$0xff]  ;;  %v1478_v11 = vld [vmem:[%s1646_s1 + $0x18] sm:$0xff]  ;;  %vm510_vm2 = vcmask 261120   ;;  %v1323_v37 = vmov 0.0  }
  0x23   : > { %1243 = vset.pattern.permute.xlu1 %v1322_v4  ;;  %v1456_v7 = vld [vmem:[%s1646_s1 + $0x8] sm:$0xff]  ;;  %381 = vperm.xlu0 %1242, %v357_v3   ;;  %v356_v9 = vld [vmem:[%s1647_s2 + $0x10] sm:$0xff]  ;;  %v354_v10 = vld [vmem:[%s1647_s2] sm:$0xff]  ;;  %vm1324_vm3 = vmmov 0  }
  0x24   : > { %371 = vperm.xlu1 %1243, %v355_v5   ;;  %1115 = vmatprep.subr.msk.mxu0 %vm397_vm1, %v363_v6  ;;  %v361_v12 = vld [vmem:[%s1649_s4 + $0x18] sm:$0xff]  ;;  %v360_v13 = vld [vmem:[%s1649_s4 + $0x10] sm:$0xff]  ;;  %v359_v14 = vld [vmem:[%s1649_s4 + $0x8] sm:$0xff] }
  0x25   : > { %1116 = vmatpush3.msk.msra.mxu0 %vm397_vm1, %v363_v6  ;;  %v358_v15 = vld [vmem:[%s1649_s4] sm:$0xff]  ;;  %v1516_v34 = vld [vmem:[%s1648_s3 + $0x8] sm:$0xff]  ;;  %v1521_v35 = vld [vmem:[%s1648_s3 + $0x10] sm:$0xff] }
  0x26   : > { %1118 = vmatmul.mubr.msk.f32.vlgmr.msra.gmra.mxu0 %vm384_vm0, %v1456_v7  ;;  %v362_v16 = vld [vmem:[%s1651_s6] sm:$0xff]  ;;  %v1530_v36 = vld [vmem:[%s1648_s3 + $0x18] sm:$0xff]  ;;  %1137 = vmatprep.subr.mxu0 %v1323_v37 }
  0x27   : > { %1120 = vmatprep.mubr.msk.f32.mxu0 %vm384_vm0, %v1462_v8  ;;  %376 = vperm.xlu0 %1242, %v356_v9   ;;  %v349_v17 = vld [vmem:[%s1648_s3] sm:$0xff] }
  0x28   : > { %366 = vperm.xlu1 %1243, %v354_v10   ;;  %1131 = vmatprep.mubr.msk.f32.mxu1 %vm510_vm2, %v349_v17  ;;  %v1063_v53 = vld [vmem:[%s1450_s17 + $0x4] sm:$0xf]  ;;  %s1052_s17 = sshll.u32 %s1434_s22, 4 }
  0x29   : > { %v353_v55 = vld [vmem:[%s1650_s5] sm:$0xff]  ;;  %s1569_s12 = scalar_lea.vmem [#allocation3], %s1052_s17 }
  0x2a   : > { %1121 = vmatmul.mubr.msk.f32.gmra.mxu0 %vm384_vm0, %v1478_v11  ;;  %s964_s15 = sshll.u32 %s1569_s12, 4  ;;  %s1591_s15 = int_to_ptr.vmem [resolvable:$true] %s964_s15 }
  0x2b   : > { %507 = vperm.xlu0 %1242, %v361_v12   ;;  %1145 = vmatprep.mubr.msk.f32.mxu0 %vm1324_vm3, %v1323_v37  ;;  %s1244_s23 = scalar_lea.vmem %s1591_s15, 256  ;;  %p1251_p3 = scmp.lt.s32.totalorder %s1591_s15, %s1249_s30 }
  0x2c   : > { %502 = vperm.xlu1 %1243, %v360_v13   ;;  %p1245_p0 = scmp.ne.s32.totalorder %s1591_s15, %s1244_s23  ;;  %p1252_p4 = scmp.lt.s32.totalorder %s1250_s8, %s1244_s23 }
  0x2e   : > { %p1246_p1 = pnand %p1245_p0, %p1408_p5  ;;  %p1253_p6 = por %p1252_p4, %p1251_p3 }
  0x2f   : > { %497 = vperm.xlu0 %1242, %v359_v14  }
  0x30   : > { %492 = vperm.xlu1 %1243, %v358_v15   ;;  %p1247_p2 = pneg %p1246_p1 }
  0x32   : > { %p1254_p7 = pnand %p1253_p6, %p1247_p2 }
  0x33   : > { %614 = vperm.xlu0 %1242, %v362_v16  }
  0x9e   : > { %v1501_v18 = vpop.permute.xlu0 %381 }
  0x9f   : > { %v1503_v20 = vpop.permute.xlu1 %371 }
  0xa2   : > { %v1506_v24 = vpop.permute.xlu0 %376 }
  0xa3   : > { %v1510_v29 = vpop.permute.xlu1 %366 }
  0xa6   : > { %v1538_v38 = vpop.permute.xlu0 %507 }
  0xa7   : > { %v1540_v40 = vpop.permute.xlu1 %502 }
  0xaa   : > { %v1543_v44 = vpop.permute.xlu0 %497 }
  0xab   : > { %v493_v49 = vpop.permute.xlu1 %492 }
  0xae   : > { %v615_v56 = vpop.permute.xlu0 %614 }
  0xe6   : > { %v1119_v19 = vpop.f32.mrf.mxu0 }
  0xe7   : > { %v473_v26 = vadd.f32 %v1119_v19, %v1503_v20 }
  0xe8   : > { %v467_v21 = vpop.f32.mrf.mxu0 }
  0xe9   : > { %v468_v30 = vadd.f32 %v467_v21, %v1510_v29  ;;  %v487_v32 = vmax.f32 %v473_v26, 0.0 }
  0xea   : > { %v1122_v22 = vpop.f32.mrf.mxu0 }
  0xeb   : > { %v483_v23 = vadd.f32 %v1122_v22, %v1501_v18  ;;  %v486_v33 = vmax.f32 %v468_v30, 0.0 }
  0xec   : > { %v477_v25 = vpop.f32.mrf.mxu0 }
  0xed   : > { %v489_v27 = vmax.f32 %v483_v23, 0.0  ;;  %v478_v28 = vadd.f32 %v477_v25, %v1506_v24 }
  0xef   : > { %v488_v31 = vmax.f32 %v478_v28, 0.0  ;;  %1123 = vmatprep.subr.mxu1 %v489_v27 }
  0xf0   : > { %1124 = vmatpush3.msra.mxu1 %v489_v27 }
  0xf1   : > { %1125 = vmatprep.subr.mxu1 %v488_v31 }
  0xf2   : > { %1126 = vmatpush3.msra.mxu1 %v488_v31 }
  0xf3   : > { %1127 = vmatprep.subr.mxu1 %v487_v32 }
  0xf4   : > { %1128 = vmatpush3.msra.mxu1 %v487_v32 }
  0xf5   : > { %1129 = vmatprep.subr.mxu1 %v486_v33 }
  0xf6   : > { %1130 = vmatpush3.msra.mxu1 %v486_v33 }
  0xf7   : > { %1132 = vmatmul.mubr.msk.f32.vlgmr.msra.gmra.mxu1 %vm510_vm2, %v1516_v34 }
  0xf8   : > { %1134 = vmatprep.mubr.msk.f32.mxu1 %vm510_vm2, %v1521_v35 }
  0xfb   : > { %1135 = vmatmul.mubr.msk.f32.gmra.mxu1 %vm510_vm2, %v1530_v36 }
  0xfc   : > { %1164 = vmatprep.mubr.msk.f32.mxu1 %vm510_vm2, %v349_v17 }
 0x1b7   : > { %v1133_v39 = vpop.f32.mrf.mxu1 }
 0x1b8   : > { %v595_v46 = vadd.f32 %v1133_v39, %v1543_v44 }
 0x1b9   : > { %v589_v41 = vpop.f32.mrf.mxu1 }
 0x1ba   : > { %v590_v50 = vadd.f32 %v589_v41, %v493_v49  ;;  %v609_v52 = vmax.f32 %v595_v46, 0.0 }
 0x1bb   : > { %v1136_v42 = vpop.f32.mrf.mxu1 }
 0x1bc   : > { %v605_v43 = vadd.f32 %v1136_v42, %v1538_v38  ;;  %v608_v54 = vmax.f32 %v590_v50, 0.0 }
 0x1bd   : > { %v599_v45 = vpop.f32.mrf.mxu1 }
 0x1be   : > { %v611_v47 = vmax.f32 %v605_v43, 0.0  ;;  %v600_v48 = vadd.f32 %v599_v45, %v1540_v40 }
 0x1c0   : > { %v610_v51 = vmax.f32 %v600_v48, 0.0  ;;  %1138 = vmatpush3.msra.mxu0 %v611_v47 }
 0x1c1   : > { %1139 = vmatprep.subr.mxu0 %v1323_v37 }
 0x1c2   : > { %1140 = vmatpush3.msra.mxu0 %v610_v51 }
 0x1c3   : > { %1141 = vmatprep.subr.mxu0 %v1323_v37 }
 0x1c4   : > { %1142 = vmatpush3.msra.mxu0 %v609_v52 }
 0x1c5   : > { %1143 = vmatprep.subr.mxu0 %v1323_v37 }
 0x1c6   : > { %1144 = vmatpush3.msra.mxu0 %v608_v54 }
 0x1c7   : > { %1146 = vmatmul.mubr.msk.f32.vlgmr.msra.gmra.mxu0 %vm510_vm2, %v353_v55  ;;  %1148 = vmatprep.subr.msk.mxu0 %vm397_vm1, %v1063_v53 }
 0x1c8   : > { %1149 = vmatpush3.msk.msra.mxu0 %vm397_vm1, %v1063_v53  ;;  %1150 = vmatprep.mubr.msk.f32.mxu0 %vm384_vm0, %v1439_v2 }
 0x1c9   : > { %1170 = vmatprep.subr.mxu0 %v1323_v37 }
 0x1cb   : > { %1151 = vmatmul.mubr.msk.f32.vlgmr.msra.gmra.mxu0 %vm384_vm0, %v1456_v7 }
 0x1cc   : > { %1153 = vmatprep.mubr.msk.f32.mxu0 %vm384_vm0, %v1462_v8 }
 0x1cf   : > { %1154 = vmatmul.mubr.msk.f32.gmra.mxu0 %vm384_vm0, %v1478_v11 }
 0x1d0   : > { %1178 = vmatprep.mubr.msk.f32.mxu0 %vm1324_vm3, %v1323_v37 }
 0x287   : > { %v686_v57 = vpop.f32.mrf.mxu0 }
 0x288   : > { %v687_v58 = vadd.f32 %v686_v57, %v615_v56 }
 0x289   : > { %v1147_v59 = vpop.f32.mrf.mxu0 }
 0x28a   : > { %v690_v60 = vmax.f32 %v687_v58, 0.0 }
 0x28b   : > { %v1152_v61 = vpop.f32.mrf.mxu0 }
 0x28c   : > { %691 = vst [vmem:[%s1569_s12] sm:$0xff] %v690_v60  ;;  %v769_v2 = vadd.f32 %v1152_v61, %v1503_v20 }
 0x28d   : > { %v763_v62 = vpop.f32.mrf.mxu0 }
 0x28e   : > { %v764_v5 = vadd.f32 %v763_v62, %v1510_v29  ;;  %v783_v7 = vmax.f32 %v769_v2, 0.0 }
 0x28f   : > { %v1155_v63 = vpop.f32.mrf.mxu0 }
 0x290   : > { %v779_v0 = vadd.f32 %v1155_v63, %v1501_v18  ;;  %v782_v8 = vmax.f32 %v764_v5, 0.0 }
 0x291   : > { %v773_v1 = vpop.f32.mrf.mxu0 }
 0x292   : > { %v785_v3 = vmax.f32 %v779_v0, 0.0  ;;  %v774_v4 = vadd.f32 %v773_v1, %v1506_v24 }
 0x294   : > { %v784_v6 = vmax.f32 %v774_v4, 0.0  ;;  %1156 = vmatprep.subr.mxu1 %v785_v3 }
 0x295   : > { %1157 = vmatpush3.msra.mxu1 %v785_v3 }
 0x296   : > { %1158 = vmatprep.subr.mxu1 %v784_v6 }
 0x297   : > { %1159 = vmatpush3.msra.mxu1 %v784_v6 }
 0x298   : > { %1160 = vmatprep.subr.mxu1 %v783_v7 }
 0x299   : > { %1161 = vmatpush3.msra.mxu1 %v783_v7 }
 0x29a   : > { %1162 = vmatprep.subr.mxu1 %v782_v8 }
 0x29b   : > { %1163 = vmatpush3.msra.mxu1 %v782_v8 }
 0x29c   : > { %1165 = vmatmul.mubr.msk.f32.vlgmr.msra.gmra.mxu1 %vm510_vm2, %v1516_v34 }
 0x29d   : > { %1167 = vmatprep.mubr.msk.f32.mxu1 %vm510_vm2, %v1521_v35 }
 0x2a0   : > { %1168 = vmatmul.mubr.msk.f32.gmra.mxu1 %vm510_vm2, %v1530_v36 }
 0x35c   : > { %v1166_v9 = vpop.f32.mrf.mxu1 }
 0x35d   : > { %v858_v14 = vadd.f32 %v1166_v9, %v1543_v44 }
 0x35e   : > { %v852_v10 = vpop.f32.mrf.mxu1 }
 0x35f   : > { %v853_v17 = vadd.f32 %v852_v10, %v493_v49  ;;  %v872_v19 = vmax.f32 %v858_v14, 0.0 }
 0x360   : > { %v1169_v11 = vpop.f32.mrf.mxu1 }
 0x361   : > { %v868_v12 = vadd.f32 %v1169_v11, %v1538_v38  ;;  %v871_v20 = vmax.f32 %v853_v17, 0.0 }
 0x362   : > { %v862_v13 = vpop.f32.mrf.mxu1 }
 0x363   : > { %v874_v15 = vmax.f32 %v868_v12, 0.0  ;;  %v863_v16 = vadd.f32 %v862_v13, %v1540_v40 }
 0x365   : > { %v873_v18 = vmax.f32 %v863_v16, 0.0  ;;  %1171 = vmatpush3.msra.mxu0 %v874_v15 }
 0x366   : > { %1172 = vmatprep.subr.mxu0 %v1323_v37 }
 0x367   : > { %1173 = vmatpush3.msra.mxu0 %v873_v18 }
 0x368   : > { %1174 = vmatprep.subr.mxu0 %v1323_v37 }
 0x369   : > { %1175 = vmatpush3.msra.mxu0 %v872_v19 }
 0x36a   : > { %1176 = vmatprep.subr.mxu0 %v1323_v37 }
 0x36b   : > { %1177 = vmatpush3.msra.mxu0 %v871_v20 }
 0x36c   : > { %1179 = vmatmul.mubr.msk.f32.vlgmr.msra.gmra.mxu0 %vm510_vm2, %v353_v55 }
 0x42c   : > { %v941_v21 = vpop.f32.mrf.mxu0 }
 0x42d   : > { %v942_v22 = vadd.f32 %v941_v21, %v615_v56 }
 0x42e   : > { %v1180_v23 = vpop.f32.mrf.mxu0 }
 0x42f   : > { %v945_v24 = vmax.f32 %v942_v22, 0.0 }
 0x431   : > { %1074 = vst [vmem:[%s1569_s12 + $0x8] sm:$0xff] %v945_v24 }
 0x432   : > { %1257 = shalt.err (!%p1254_p7)
}
 0x433   : > { %s1258_s10 = scalar_lea.hbm %s1596_s20, 256  ;;  %s1262_s16 = scalar_lea.hbm %s1652_s7, 512 }
 0x434   : > { %p1259_p8 = scmp.ne.s32.totalorder %s1596_s20, %s1258_s10  ;;  %p1263_p13 = scmp.lt.s32.totalorder %s1596_s20, %s1652_s7 }
 0x435   : > { %p1264_p0 = scmp.lt.s32.totalorder %s1262_s16, %s1258_s10 }
 0x436   : > { %p1260_p11 = pnand %p1259_p8, %p1408_p5 }
 0x437   : > { %p1265_p1 = por %p1264_p0, %p1263_p13 }
 0x438   : > { %p1261_p12 = pneg %p1260_p11 }
 0x43a   : > { %p1266_p2 = pnand %p1265_p1, %p1261_p12 }
 0x43c   : > { %1269 = shalt.err (!%p1266_p2)
}
 0x43d   : > { %s1326_s23 = smov 128   ;;  %s1327_s27 = smov 256  }
 0x43e   : > { %s1328_s30 = smov 8  }
 0x43f   : > { %1181 = dma.vmem_to_hbm [thread:$0]  (%p1408_p5), %s1591_s15, 256, %s1596_s20, %s949_s21, %s1326_s23, %s1327_s27, %s1328_s30  }
 0x440 PF: > { %s979_s8 = sand.u32 1, %s1300_s24   ;;  %p1184_p3 = pnand %p1047_p10, %p1419_p9 }
 0x441   : > { %s980_s10 = scalar_lea.sflag [#allocation4], %s979_s8 }
 0x442   : > { %p1185_p4 = pneg %p1184_p3 }
 0x444   : > { %1295 = dma.done.wait (%p1185_p4), %s980_s10, 256  }
 0x445   : > { %1297 = vsyncadd (%p1185_p4), %s980_s10, 4294967040  ;;  %s20_s29 = sadd.s32 1, %s1320_s29   ;;  %s1655_s24 = smov %s1304_s25 }
 0x446   : > { %p17_p6 = scmp.ge.s32.totalorder %s20_s29, 4   ;;  %s1656_s25 = smov %s1308_s26 }
 0x447   : > { %s1657_s26 = smov %s1417_s13  ;;  %s1658_s27 = smov %s1316_s28 }
 0x448   : > { %s1659_s28 = smov %s1661_s9  ;;  %19 = sbr.rel (!%p17_p6) target bundleno = 4 (0x4), region = 131 }
 0x44d   :  { %985 = vsyncpa [#allocation4], 1 }
 0x44e   :  { %987 = vsyncpa [#allocation4 + $0x1], 1 }

</bundles_post_ra>
